<compile_context>
chip_gen: v5e
topology: v5e:2x2
jax: 0.10.0
libtpu: 0.0.40
codegen_flags: <defaults>
</compile_context>

<pallas_src>
import functools

import jax
import jax.numpy as jnp
from jax.experimental import pallas as pl
from jax.experimental.pallas import tpu as pltpu


# ----------------------------------------------------------------------------
# Kernel
# ----------------------------------------------------------------------------
def _softmax_lastdim(z):
    """Numerically-stable softmax over the last axis, computed in f32."""
    z = z - jnp.max(z, axis=-1, keepdims=True)
    e = jnp.exp(z)
    s = jnp.sum(e, axis=-1, keepdims=True)
    r = pl.reciprocal(s, approx=True)   # EUP vrcp (otherwise-idle slot)
    r = r * (2.0 - s * r)               # one Newton step -> ~f32 accuracy
    return e * r


def ffn_softmax_kernel(x_ref, w1_ref, b1_ref, w2_ref, b2_ref, w3_ref, b3_ref,
                       o_ref):
    # Biases arrive pre-padded and pre-cast to f32 from the wrapper.
    x = x_ref[...]

    h = jnp.dot(x.astype(w1_ref.dtype), w1_ref[...],
                preferred_element_type=jnp.float32)
    h = _softmax_lastdim(h + b1_ref[...])

    h = jnp.dot(h.astype(w2_ref.dtype), w2_ref[...],
                preferred_element_type=jnp.float32)
    h = _softmax_lastdim(h + b2_ref[...])

    h = jnp.dot(h.astype(w3_ref.dtype), w3_ref[...],
                preferred_element_type=jnp.float32)
    o_ref[...] = _softmax_lastdim(h + b3_ref[...]).astype(o_ref.dtype)


# ----------------------------------------------------------------------------
# One-time capability probe: is pipeline_mode=pl.Buffered(1) accepted?
# ----------------------------------------------------------------------------
_BUFFERED_ONE_OK = None


def _probe_buffered_one():
    """Compile a tiny kernel that mirrors the real pattern (tiled input +
    constant-index single-buffered input).  Run once; result is cached."""
    if not hasattr(pl, "Buffered"):
        return False
    try:
        def k(a_ref, w_ref, o_ref):
            o_ref[...] = a_ref[...] + w_ref[...]

        f = pl.pallas_call(
            k,
            out_shape=jax.ShapeDtypeStruct((16, 128), jnp.float32),
            grid_spec=pl.GridSpec(
                grid=(2,),
                in_specs=[
                    pl.BlockSpec((8, 128), lambda i: (i, 0)),
                    pl.BlockSpec((8, 128), lambda i: (0, 0),
                                 pipeline_mode=pl.Buffered(1)),
                ],
                out_specs=pl.BlockSpec((8, 128), lambda i: (i, 0)),
            ),
        )
        jax.jit(f).lower(
            jax.ShapeDtypeStruct((16, 128), jnp.float32),
            jax.ShapeDtypeStruct((8, 128), jnp.float32),
        ).compile()
        return True
    except Exception:
        # Narrow in effect: only toggles a perf knob (weight buffering mode);
        # real lowering errors from the main kernel are never swallowed.
        return False


def _single_buffer_supported():
    global _BUFFERED_ONE_OK
    if _BUFFERED_ONE_OK is None:
        _BUFFERED_ONE_OK = _probe_buffered_one()
    return _BUFFERED_ONE_OK


# ----------------------------------------------------------------------------
# Wrapper helpers
# ----------------------------------------------------------------------------
def _default_batch_tile(B, cap=512):
    """Single grid step (tb = B) whenever B <= cap; otherwise the largest
    sublane-aligned (x8) divisor of B that is <= cap.  Per-step overhead is
    ~0.35 us, so small batches should never be split."""
    cap = int(cap)
    if B <= cap:
        return B
    for tb in range(cap, 7, -1):
        if B % tb == 0 and tb % 8 == 0:
            return tb
    # No aligned divisor <= cap (pathological B): run as a single step.
    return B


def _round_up(n, m=128):
    return ((n + m - 1) // m) * m


_NEG_BIG = -1e30  # padded softmax logits -> exp underflows to exactly 0


def _pad_params(params):
    """Pad hidden dims to multiples of 128 lanes.  Padded weight cols/rows are
    zero; padded bias lanes are -1e30 so softmax drives those lanes to 0 and
    the normalization over real lanes is unchanged.  Biases are cast to f32."""
    w1, b1 = params["w1"], params["b1"]
    w2, b2 = params["w2"], params["b2"]
    w3, b3 = params["w3"], params["b3"]
    h1, h2 = w1.shape[1], w2.shape[1]
    h1p, h2p = _round_up(h1), _round_up(h2)

    w1p = jnp.pad(w1, ((0, 0), (0, h1p - h1)))
    b1p = jnp.pad(b1.astype(jnp.float32), ((0, 0), (0, h1p - h1)),
                  constant_values=_NEG_BIG)
    w2p = jnp.pad(w2, ((0, h1p - h1), (0, h2p - h2)))
    b2p = jnp.pad(b2.astype(jnp.float32), ((0, 0), (0, h2p - h2)),
                  constant_values=_NEG_BIG)
    w3p = jnp.pad(w3, ((0, h2p - h2), (0, 0)))
    b3p = b3.astype(jnp.float32)
    return w1p, b1p, w2p, b2p, w3p, b3p


def _vmem_capacity_bytes():
    try:
        return int(pltpu.get_tpu_info().vmem_capacity_bytes)
    except Exception:
        return 64 << 20  # conservative: v7x per-TensorCore VMEM


def _nbytes(a):
    return int(a.size) * jnp.dtype(a.dtype).itemsize


# ----------------------------------------------------------------------------
# Forward
# ----------------------------------------------------------------------------
@functools.partial(jax.jit, static_argnames=("batch_tile",
                                             "single_buffer_weights"))
def _forward_jit(x, params, *, batch_tile, single_buffer_weights):
    B, in_dim = x.shape
    tb = batch_tile
    assert B % tb == 0, "batch_tile must divide batch"

    consts = _pad_params(params)          # (w1, b1, w2, b2, w3, b3), padded
    out_dim = consts[4].shape[1]

    # VMEM budget: weights counted once when single-buffered (constant index
    # map), double-buffered x/out tiles, + headroom for compiler scratch.
    # Cap is generation-aware (64 MiB on v7x, 128 MiB on v5e/v6e).
    weight_bytes = sum(_nbytes(a) for a in consts)
    weight_mult = 1 if single_buffer_weights else 2
    io_bytes = 2 * tb * (in_dim + out_dim) * jnp.dtype(x.dtype).itemsize
    need = weight_mult * weight_bytes + io_bytes + (4 << 20)
    cap = (3 * _vmem_capacity_bytes()) // 4
    vmem_limit = int(min(cap, max(16 << 20, need)))

    if single_buffer_weights:
        # Constant block index -> one buffer is enough; halves weight VMEM.
        const_spec = lambda a: pl.BlockSpec(a.shape, lambda i: (0, 0),
                                            pipeline_mode=pl.Buffered(1))
    else:
        const_spec = lambda a: pl.BlockSpec(a.shape, lambda i: (0, 0))

    grid_spec = pl.GridSpec(
        grid=(B // tb,),
        in_specs=[pl.BlockSpec((tb, in_dim), lambda i: (i, 0))]
                 + [const_spec(a) for a in consts],
        # out_dim=16 < 128 lanes -> masked stores; at these sizes writeback is
        # hidden behind compute, so the lane-dense output relayout is skipped.
        out_specs=pl.BlockSpec((tb, out_dim), lambda i: (i, 0)),
    )

    return pl.pallas_call(
        ffn_softmax_kernel,
        out_shape=jax.ShapeDtypeStruct((B, out_dim), x.dtype),
        grid_spec=grid_spec,
        compiler_params=pltpu.CompilerParams(
            dimension_semantics=("parallel",),
            vmem_limit_bytes=vmem_limit),
    )(x, *consts)


def ffn_softmax_forward(x, params, *, batch_tile=None):
    """x: [B, input_dim].  params: weights (in, out) + biases (1, out)."""
    tb = batch_tile or _default_batch_tile(x.shape[0])
    return _forward_jit(x, params, batch_tile=int(tb),
                        single_buffer_weights=_single_buffer_supported())


# ----------------------------------------------------------------------------
# Params / reference
# ----------------------------------------------------------------------------
def init_params(key, input_dim, hidden_dim_1, hidden_dim_2, output_dim,
                dtype=jnp.float32):
    """PyTorch-Linear-like uniform init.  Weights stored as (in, out).
    bf16 weights are valid on ALL generations (v5e/v6e/v7x): they are only
    used as MXU operands; accumulation and softmax stay f32 in-kernel."""
    def linear(k, fan_in, fan_out):
        kw, kb = jax.random.split(k)
        bound = 1.0 / jnp.sqrt(fan_in)
        w = jax.random.uniform(kw, (fan_in, fan_out), jnp.float32, -bound, bound)
        b = jax.random.uniform(kb, (1, fan_out), jnp.float32, -bound, bound)
        return w.astype(dtype), b.astype(dtype)

    k1, k2, k3 = jax.random.split(key, 3)
    w1, b1 = linear(k1, input_dim, hidden_dim_1)
    w2, b2 = linear(k2, hidden_dim_1, hidden_dim_2)
    w3, b3 = linear(k3, hidden_dim_2, output_dim)
    return {"w1": w1, "b1": b1, "w2": w2, "b2": b2, "w3": w3, "b3": b3}


def _reference_forward(x, p):
    def sm(z):
        z = z - jnp.max(z, axis=-1, keepdims=True)
        e = jnp.exp(z)
        return e / jnp.sum(e, axis=-1, keepdims=True)
    f32 = lambda a: a.astype(jnp.float32)
    h = sm(x @ f32(p["w1"]) + f32(p["b1"]))
    h = sm(h @ f32(p["w2"]) + f32(p["b2"]))
    return sm(h @ f32(p["w3"]) + f32(p["b3"]))


# ----------------------------------------------------------------------------
# Demo / self-check
# ----------------------------------------------------------------------------
if __name__ == "__main__":
    input_dim, hidden_dim_1, hidden_dim_2, output_dim = 32, 64, 48, 16
    B = 16  # small batch -> single grid step (tb = B), no per-step overhead

    key = jax.random.PRNGKey(0)
    kx, kp = jax.random.split(key)
    x = jax.random.normal(kx, (B, input_dim), jnp.float32)
    params = init_params(kp, input_dim, hidden_dim_1, hidden_dim_2, output_dim)

    out = jax.block_until_ready(ffn_softmax_forward(x, params))

    ref = _reference_forward(x, params)
    assert out.shape == (B, output_dim)
    assert jnp.allclose(out, ref, atol=1e-5, rtol=1e-5), "mismatch vs reference"
    assert jnp.allclose(jnp.sum(out, axis=-1), 1.0, atol=1e-5), "rows must sum to 1"

    print("KERNEL_OK")
</pallas_src>

<mosaic_0001>
module attributes {stable_mosaic.version = 11 : i64} {
  func.func @ffn_softmax_kernel(%arg0: i32, %arg1: memref<16x32xf32, #tpu.memory_space<vmem>>, %arg2: memref<32x128xf32, #tpu.memory_space<vmem>>, %arg3: memref<1x128xf32, #tpu.memory_space<vmem>>, %arg4: memref<128x128xf32, #tpu.memory_space<vmem>>, %arg5: memref<1x128xf32, #tpu.memory_space<vmem>>, %arg6: memref<128x16xf32, #tpu.memory_space<vmem>>, %arg7: memref<1x16xf32, #tpu.memory_space<vmem>>, %arg8: memref<16x16xf32, #tpu.memory_space<vmem>>) attributes {dimension_semantics = [#tpu.dimension_semantics<parallel>], iteration_bounds = array<i64: 1>, scalar_prefetch = 0 : i64, scratch_operands = 0 : i64, tpu.core_type = #tpu.core_type<tc>, window_params = [{transform_indices = @transform_0, window_bounds = array<i64: 16, 32>}, {pipeline_mode = #tpu.pipeline_mode<synchronous>, transform_indices = @transform_1, window_bounds = array<i64: 32, 128>}, {pipeline_mode = #tpu.pipeline_mode<synchronous>, transform_indices = @transform_2, window_bounds = array<i64: 1, 128>}, {pipeline_mode = #tpu.pipeline_mode<synchronous>, transform_indices = @transform_3, window_bounds = array<i64: 128, 128>}, {pipeline_mode = #tpu.pipeline_mode<synchronous>, transform_indices = @transform_4, window_bounds = array<i64: 1, 128>}, {pipeline_mode = #tpu.pipeline_mode<synchronous>, transform_indices = @transform_5, window_bounds = array<i64: 128, 16>}, {pipeline_mode = #tpu.pipeline_mode<synchronous>, transform_indices = @transform_6, window_bounds = array<i64: 1, 16>}, {transform_indices = @transform_7, window_bounds = array<i64: 16, 16>}]} {
    %c0 = arith.constant 0 : index
    %c0_0 = arith.constant 0 : index
    %0 = vector.load %arg1[%c0, %c0_0] : memref<16x32xf32, #tpu.memory_space<vmem>>, vector<16x32xf32>
    %c0_1 = arith.constant 0 : index
    %c0_2 = arith.constant 0 : index
    %1 = vector.load %arg2[%c0_1, %c0_2] : memref<32x128xf32, #tpu.memory_space<vmem>>, vector<32x128xf32>
    %cst = arith.constant dense<0.000000e+00> : vector<16x128xf32>
    %2 = tpu.matmul %0, %1, %cst {dimension_numbers = #tpu.dot_dimension_numbers<[1], [0], [0], [1], [0, 0, 1, 1], [], []>} : vector<16x32xf32>, vector<32x128xf32>, vector<16x128xf32> -> vector<16x128xf32>
    %c0_3 = arith.constant 0 : index
    %c0_4 = arith.constant 0 : index
    %3 = vector.load %arg3[%c0_3, %c0_4] : memref<1x128xf32, #tpu.memory_space<vmem>>, vector<1x128xf32>
    %4 = vector.broadcast %3 : vector<1x128xf32> to vector<16x128xf32>
    %5 = arith.addf %2, %4 : vector<16x128xf32>
    %cst_5 = arith.constant dense<0xFF800000> : vector<16xf32>
    %6 = vector.multi_reduction <maximumf>, %5, %cst_5 [1] : vector<16x128xf32> to vector<16xf32>
    %7 = vector.shape_cast %6 : vector<16xf32> to vector<16x1xf32>
    %8 = vector.broadcast %7 : vector<16x1xf32> to vector<16x128xf32>
    %9 = arith.subf %5, %8 : vector<16x128xf32>
    %10 = math.exp %9 : vector<16x128xf32>
    %cst_6 = arith.constant dense<0.000000e+00> : vector<16xf32>
    %11 = vector.multi_reduction <add>, %10, %cst_6 [1] : vector<16x128xf32> to vector<16xf32>
    %12 = vector.shape_cast %11 : vector<16xf32> to vector<16x1xf32>
    %13 = tpu.reciprocal %12 {approx = true} : vector<16x1xf32> -> vector<16x1xf32>
    %14 = arith.mulf %12, %13 : vector<16x1xf32>
    %cst_7 = arith.constant 2.000000e+00 : f32
    %15 = vector.broadcast %cst_7 : f32 to vector<16x1xf32>
    %16 = arith.subf %15, %14 : vector<16x1xf32>
    %17 = arith.mulf %13, %16 : vector<16x1xf32>
    %18 = vector.broadcast %17 : vector<16x1xf32> to vector<16x128xf32>
    %19 = arith.mulf %10, %18 : vector<16x128xf32>
    %c0_8 = arith.constant 0 : index
    %c0_9 = arith.constant 0 : index
    %20 = vector.load %arg4[%c0_8, %c0_9] : memref<128x128xf32, #tpu.memory_space<vmem>>, vector<128x128xf32>
    %cst_10 = arith.constant dense<0.000000e+00> : vector<16x128xf32>
    %21 = tpu.matmul %19, %20, %cst_10 {dimension_numbers = #tpu.dot_dimension_numbers<[1], [0], [0], [1], [0, 0, 1, 1], [], []>} : vector<16x128xf32>, vector<128x128xf32>, vector<16x128xf32> -> vector<16x128xf32>
    %c0_11 = arith.constant 0 : index
    %c0_12 = arith.constant 0 : index
    %22 = vector.load %arg5[%c0_11, %c0_12] : memref<1x128xf32, #tpu.memory_space<vmem>>, vector<1x128xf32>
    %23 = vector.broadcast %22 : vector<1x128xf32> to vector<16x128xf32>
    %24 = arith.addf %21, %23 : vector<16x128xf32>
    %cst_13 = arith.constant dense<0xFF800000> : vector<16xf32>
    %25 = vector.multi_reduction <maximumf>, %24, %cst_13 [1] : vector<16x128xf32> to vector<16xf32>
    %26 = vector.shape_cast %25 : vector<16xf32> to vector<16x1xf32>
    %27 = vector.broadcast %26 : vector<16x1xf32> to vector<16x128xf32>
    %28 = arith.subf %24, %27 : vector<16x128xf32>
    %29 = math.exp %28 : vector<16x128xf32>
    %cst_14 = arith.constant dense<0.000000e+00> : vector<16xf32>
    %30 = vector.multi_reduction <add>, %29, %cst_14 [1] : vector<16x128xf32> to vector<16xf32>
    %31 = vector.shape_cast %30 : vector<16xf32> to vector<16x1xf32>
    %32 = tpu.reciprocal %31 {approx = true} : vector<16x1xf32> -> vector<16x1xf32>
    %33 = arith.mulf %31, %32 : vector<16x1xf32>
    %cst_15 = arith.constant 2.000000e+00 : f32
    %34 = vector.broadcast %cst_15 : f32 to vector<16x1xf32>
    %35 = arith.subf %34, %33 : vector<16x1xf32>
    %36 = arith.mulf %32, %35 : vector<16x1xf32>
    %37 = vector.broadcast %36 : vector<16x1xf32> to vector<16x128xf32>
    %38 = arith.mulf %29, %37 : vector<16x128xf32>
    %c0_16 = arith.constant 0 : index
    %c0_17 = arith.constant 0 : index
    %39 = vector.load %arg6[%c0_16, %c0_17] : memref<128x16xf32, #tpu.memory_space<vmem>>, vector<128x16xf32>
    %cst_18 = arith.constant dense<0.000000e+00> : vector<16x16xf32>
    %40 = tpu.matmul %38, %39, %cst_18 {dimension_numbers = #tpu.dot_dimension_numbers<[1], [0], [0], [1], [0, 0, 1, 1], [], []>} : vector<16x128xf32>, vector<128x16xf32>, vector<16x16xf32> -> vector<16x16xf32>
    %c0_19 = arith.constant 0 : index
    %c0_20 = arith.constant 0 : index
    %41 = vector.load %arg7[%c0_19, %c0_20] : memref<1x16xf32, #tpu.memory_space<vmem>>, vector<1x16xf32>
    %42 = vector.broadcast %41 : vector<1x16xf32> to vector<16x16xf32>
    %43 = arith.addf %40, %42 : vector<16x16xf32>
    %cst_21 = arith.constant dense<0xFF800000> : vector<16xf32>
    %44 = vector.multi_reduction <maximumf>, %43, %cst_21 [1] : vector<16x16xf32> to vector<16xf32>
    %45 = vector.shape_cast %44 : vector<16xf32> to vector<16x1xf32>
    %46 = vector.broadcast %45 : vector<16x1xf32> to vector<16x16xf32>
    %47 = arith.subf %43, %46 : vector<16x16xf32>
    %48 = math.exp %47 : vector<16x16xf32>
    %cst_22 = arith.constant dense<0.000000e+00> : vector<16xf32>
    %49 = vector.multi_reduction <add>, %48, %cst_22 [1] : vector<16x16xf32> to vector<16xf32>
    %50 = vector.shape_cast %49 : vector<16xf32> to vector<16x1xf32>
    %51 = tpu.reciprocal %50 {approx = true} : vector<16x1xf32> -> vector<16x1xf32>
    %52 = arith.mulf %50, %51 : vector<16x1xf32>
    %cst_23 = arith.constant 2.000000e+00 : f32
    %53 = vector.broadcast %cst_23 : f32 to vector<16x1xf32>
    %54 = arith.subf %53, %52 : vector<16x1xf32>
    %55 = arith.mulf %51, %54 : vector<16x1xf32>
    %56 = vector.broadcast %55 : vector<16x1xf32> to vector<16x16xf32>
    %57 = arith.mulf %48, %56 : vector<16x16xf32>
    %c0_24 = arith.constant 0 : index
    %c0_25 = arith.constant 0 : index
    %58 = vector.load %arg8[%c0_24, %c0_25] : memref<16x16xf32, #tpu.memory_space<vmem>>, vector<16x16xf32>
    tpu.vector_store %arg8[%c0_24, %c0_25], %57 {strides = array<i32>} : memref<16x16xf32, #tpu.memory_space<vmem>>, vector<16x16xf32>,
    return
  }
  func.func @transform_0(%arg0: i32) -> (i32, i32) {
    %c0_i32 = arith.constant 0 : i32
    %c0_i32_0 = arith.constant 0 : i32
    return %arg0, %c0_i32 : i32, i32
  }
  func.func @transform_1(%arg0: i32) -> (i32, i32) {
    %c0_i32 = arith.constant 0 : i32
    %c0_i32_0 = arith.constant 0 : i32
    %c0_i32_1 = arith.constant 0 : i32
    return %c0_i32, %c0_i32_0 : i32, i32
  }
  func.func @transform_2(%arg0: i32) -> (i32, i32) {
    %c0_i32 = arith.constant 0 : i32
    %c0_i32_0 = arith.constant 0 : i32
    %c0_i32_1 = arith.constant 0 : i32
    return %c0_i32, %c0_i32_0 : i32, i32
  }
  func.func @transform_3(%arg0: i32) -> (i32, i32) {
    %c0_i32 = arith.constant 0 : i32
    %c0_i32_0 = arith.constant 0 : i32
    %c0_i32_1 = arith.constant 0 : i32
    return %c0_i32, %c0_i32_0 : i32, i32
  }
  func.func @transform_4(%arg0: i32) -> (i32, i32) {
    %c0_i32 = arith.constant 0 : i32
    %c0_i32_0 = arith.constant 0 : i32
    %c0_i32_1 = arith.constant 0 : i32
    return %c0_i32, %c0_i32_0 : i32, i32
  }
  func.func @transform_5(%arg0: i32) -> (i32, i32) {
    %c0_i32 = arith.constant 0 : i32
    %c0_i32_0 = arith.constant 0 : i32
    %c0_i32_1 = arith.constant 0 : i32
    return %c0_i32, %c0_i32_0 : i32, i32
  }
  func.func @transform_6(%arg0: i32) -> (i32, i32) {
    %c0_i32 = arith.constant 0 : i32
    %c0_i32_0 = arith.constant 0 : i32
    %c0_i32_1 = arith.constant 0 : i32
    return %c0_i32, %c0_i32_0 : i32, i32
  }
  func.func @transform_7(%arg0: i32) -> (i32, i32) {
    %c0_i32 = arith.constant 0 : i32
    %c0_i32_0 = arith.constant 0 : i32
    return %arg0, %c0_i32 : i32, i32
  }
}

</mosaic_0001>

<bundles_post_ra>
// kernel: _forward_jit.1
= control target key start
LH: loop header
LB: loop body
LE: loop exit
PB: predicated region body
PF: predicated region fallthrough
CT: control target
= control target key end

     0   :  { %s499_s0 = inlined_call_operand.vmem [shape: f32[16,32], index: 0, kind: input, shape index: {}]   ;;  %s500_s1 = inlined_call_operand.vmem [shape: f32[32,128], index: 1, kind: input, shape index: {}]   ;;  %s501_s2 = inlined_call_operand.vmem [shape: f32[1,128], index: 2, kind: input, shape index: {}]   ;;  %s502_s3 = inlined_call_operand.vmem [shape: f32[128,128], index: 3, kind: input, shape index: {}]   ;;  %s503_s4 = inlined_call_operand.vmem [shape: f32[1,128], index: 4, kind: input, shape index: {}]   ;;  %s504_s5 = inlined_call_operand.vmem [shape: f32[128,16], index: 5, kind: input, shape index: {}]   ;;  %s505_s6 = inlined_call_operand.vmem [shape: f32[1,16], index: 6, kind: input, shape index: {}]   ;;  %s506_s7 = inlined_call_operand.hbm [shape: f32[16,16], index: 7, kind: output, shape index: {}]  }
   0x1   :  { %v32_v0 = vld [vmem:[%s500_s1 + $0x18] sm:$0xff]  ;;  %v31_v1 = vld [vmem:[%s500_s1 + $0x10] sm:$0xff]  ;;  %v30_v2 = vld [vmem:[%s500_s1 + $0x8] sm:$0xff] }
   0x2   :  { %56 = vmatpush.msra.mxu0 %v32_v0 }
   0x4   :  { %57 = vmatpush.msra.mxu0 %v31_v1 }
   0x5   :  { %12 = vsyncpa [#allocation3], 0  ;;  %v29_v3 = vld [vmem:[%s500_s1] sm:$0xff]  ;;  %vm37_vm0 = vcmask 261120   ;;  %v28_v5 = vld [vmem:[%s499_s0 + $0x8] sm:$0xff]  ;;  %vm201_vm1 = vcmask 130048  }
   0x6   :  { %58 = vmatpush.msra.mxu0 %v30_v2  ;;  %v27_v4 = vld [vmem:[%s499_s0] sm:$0xff]  ;;  %v106_v11 = vld [vmem:[%s502_s3 + $0x78] sm:$0xff]  ;;  %v105_v12 = vld [vmem:[%s502_s3 + $0x70] sm:$0xff]  ;;  %s238_s26 = sshll.u32 %s506_s7, 4  ;;  %s325_s27 = smov 128   ;;  %s239_s26 = int_to_ptr.hbm [resolvable:$true] %s238_s26 }
   0x7   :  { %v271_v6 = vld [vmem:[%s501_s2] ss:$0 sm:$0xff]  ;;  %111 = vmatpush.msra.mxu1 %v106_v11  ;;  %252 = vmatpush.msra.mxu3 %v106_v11  ;;  %v104_v13 = vld [vmem:[%s502_s3 + $0x68] sm:$0xff]  ;;  %v102_v15 = vld [vmem:[%s502_s3 + $0x58] sm:$0xff]  ;;  %s326_s28 = smov 8  }
   0x8   :  { %59 = vmatpush.msra.mxu0 %v29_v3  ;;  %v103_v14 = vld [vmem:[%s502_s3 + $0x60] sm:$0xff]  ;;  %v101_v16 = vld [vmem:[%s502_s3 + $0x50] sm:$0xff]  ;;  %v100_v17 = vld [vmem:[%s502_s3 + $0x48] sm:$0xff] }
   0x9   :  { %250 = vmatmul.msk.f32.vlgmr.msra.gmra.mxu0 %vm37_vm0, %v27_v4  ;;  %112 = vmatpush.msra.mxu1 %v105_v12  ;;  %v99_v19 = vld [vmem:[%s502_s3 + $0x40] sm:$0xff]  ;;  %v98_v27 = vld [vmem:[%s502_s3 + $0x38] sm:$0xff]  ;;  %v97_v28 = vld [vmem:[%s502_s3 + $0x30] sm:$0xff] }
   0xa   :  { %253 = vmatpush.msra.mxu3 %v105_v12  ;;  %v96_v29 = vld [vmem:[%s502_s3 + $0x28] sm:$0xff]  ;;  %v95_v30 = vld [vmem:[%s502_s3 + $0x20] sm:$0xff]  ;;  %v94_v31 = vld [vmem:[%s502_s3 + $0x18] sm:$0xff] }
   0xb   :  { %113 = vmatpush.msra.mxu1 %v104_v13  ;;  %v93_v32 = vld [vmem:[%s502_s3 + $0x10] sm:$0xff]  ;;  %v92_v33 = vld [vmem:[%s502_s3 + $0x8] sm:$0xff]  ;;  %v91_v34 = vld [vmem:[%s502_s3] sm:$0xff] }
   0xc   :  { %254 = vmatpush.msra.mxu3 %v104_v13  ;;  %v272_v47 = vld [vmem:[%s503_s4] ss:$0 sm:$0xff]  ;;  %v173_v52 = vld [vmem:[%s504_s5 + $0x78] sm:$0xff]  ;;  %v172_v53 = vld [vmem:[%s504_s5 + $0x70] sm:$0xff] }
   0xd   :  { %114 = vmatpush.msra.mxu1 %v103_v14  ;;  %178 = vmatpush.msra.mxu2 %v173_v52  ;;  %v171_v54 = vld [vmem:[%s504_s5 + $0x68] sm:$0xff]  ;;  %v170_v55 = vld [vmem:[%s504_s5 + $0x60] sm:$0xff]  ;;  %v169_v57 = vld [vmem:[%s504_s5 + $0x58] sm:$0xff] }
   0xe   :  { %255 = vmatpush.msra.mxu3 %v103_v14  ;;  %v168_v59 = vld [vmem:[%s504_s5 + $0x50] sm:$0xff]  ;;  %v167_v61 = vld [vmem:[%s504_s5 + $0x48] sm:$0xff]  ;;  %v166_v62 = vld [vmem:[%s504_s5 + $0x40] sm:$0xff] }
   0xf   :  { %115 = vmatpush.msra.mxu1 %v102_v15  ;;  %179 = vmatpush.msra.mxu2 %v172_v53  ;;  %v165_v4 = vld [vmem:[%s504_s5 + $0x38] sm:$0xff]  ;;  %v158_v11 = vld [vmem:[%s504_s5] sm:$0xff] }
  0x10   :  { %256 = vmatpush.msra.mxu3 %v102_v15 }
  0x11   :  { %251 = vmatmul.msk.f32.gmra.mxu0 %vm37_vm0, %v28_v5  ;;  %116 = vmatpush.msra.mxu1 %v101_v16  ;;  %v164_v5 = vld [vmem:[%s504_s5 + $0x30] sm:$0xff] }
  0x12   :  { %257 = vmatpush.msra.mxu3 %v101_v16  ;;  %180 = vmatpush.msra.mxu2 %v171_v54 }
  0x13   :  { %117 = vmatpush.msra.mxu1 %v100_v17 }
  0x14   :  { %258 = vmatpush.msra.mxu3 %v100_v17  ;;  %181 = vmatpush.msra.mxu2 %v170_v55 }
  0x15   :  { %118 = vmatpush.msra.mxu1 %v99_v19 }
  0x16   :  { %259 = vmatpush.msra.mxu3 %v99_v19  ;;  %182 = vmatpush.msra.mxu2 %v169_v57 }
  0x17   :  { %119 = vmatpush.msra.mxu1 %v98_v27 }
  0x18   :  { %260 = vmatpush.msra.mxu3 %v98_v27  ;;  %183 = vmatpush.msra.mxu2 %v168_v59 }
  0x19   :  { %120 = vmatpush.msra.mxu1 %v97_v28 }
  0x1a   :  { %261 = vmatpush.msra.mxu3 %v97_v28  ;;  %184 = vmatpush.msra.mxu2 %v167_v61 }
  0x1b   :  { %121 = vmatpush.msra.mxu1 %v96_v29 }
  0x1c   :  { %262 = vmatpush.msra.mxu3 %v96_v29  ;;  %185 = vmatpush.msra.mxu2 %v166_v62 }
  0x1d   :  { %122 = vmatpush.msra.mxu1 %v95_v30 }
  0x1e   :  { %263 = vmatpush.msra.mxu3 %v95_v30  ;;  %186 = vmatpush.msra.mxu2 %v165_v4 }
  0x1f   :  { %123 = vmatpush.msra.mxu1 %v94_v31 }
  0x20   :  { %264 = vmatpush.msra.mxu3 %v94_v31  ;;  %187 = vmatpush.msra.mxu2 %v164_v5 }
  0x21   :  { %124 = vmatpush.msra.mxu1 %v93_v32 }
  0x22   :  { %265 = vmatpush.msra.mxu3 %v93_v32 }
  0x23   :  { %125 = vmatpush.msra.mxu1 %v92_v33 }
  0x24   :  { %266 = vmatpush.msra.mxu3 %v92_v33 }
  0x25   :  { %126 = vmatpush.msra.mxu1 %v91_v34 }
  0x26   :  { %267 = vmatpush.msra.mxu3 %v91_v34 }
  0x86   :  { %v61_v7 = vpop.f32.mrf.mxu0 }
  0x87   :  { %v62_v8 = vadd.f32 %v271_v6, %v61_v7  ;;  %v162_v7 = vld [vmem:[%s504_s5 + $0x20] sm:$0xff] }
  0x89   :  { %67 = vmax.xlane.f32.xlu0 %v62_v8 }
  0x8e   :  { %v64_v9 = vpop.f32.mrf.mxu0 }
  0x8f   :  { %v65_v10 = vadd.f32 %v271_v6, %v64_v9  ;;  %v163_v6 = vld [vmem:[%s504_s5 + $0x28] sm:$0xff]  ;;  %v160_v9 = vld [vmem:[%s504_s5 + $0x10] sm:$0xff] }
  0x90   :  { %188 = vmatpush.msra.mxu2 %v163_v6 }
  0x91   :  { %69 = vmax.xlane.f32.xlu0 %v65_v10 }
  0x92   :  { %189 = vmatpush.msra.mxu2 %v162_v7 }
  0xfc   :  { %v68_v18 = vpop.xlane.xlu0 %67 }
  0xfd   :  { %v71_v20 = vsub.f32 %v62_v8, %v68_v18  ;;  %v161_v8 = vld [vmem:[%s504_s5 + $0x18] sm:$0xff] }
  0xfe   :  { %190 = vmatpush.msra.mxu2 %v161_v8 }
  0xff   :  { %v73_v21 = vmul.f32 1.442695, %v71_v20 }
 0x100   :  { %191 = vmatpush.msra.mxu2 %v160_v9 }
 0x101   :  { %274 = vpow2.f32 %v73_v21 }
 0x104   :  { %v70_v22 = vpop.xlane.xlu0 %69 }
 0x105   :  { %v72_v23 = vsub.f32 %v65_v10, %v70_v22  ;;  %v159_v10 = vld [vmem:[%s504_s5 + $0x8] sm:$0xff]  ;;  %s324_s5 = smov [#allocation2]  }
 0x106   :  { %192 = vmatpush.msra.mxu2 %v159_v10 }
 0x107   :  { %v275_v24 = vpop.eup %274  ;;  %v75_v25 = vmul.f32 1.442695, %v72_v23 }
 0x108   :  { %77 = vadd.xlane.f32.xlu1 %v275_v24  ;;  %193 = vmatpush.msra.mxu2 %v158_v11 }
 0x109   :  { %276 = vpow2.f32 %v75_v25 }
 0x10f   :  { %v277_v26 = vpop.eup %276 }
 0x110   :  { %79 = vadd.xlane.f32.xlu1 %v277_v26 }
 0x17b   :  { %v78_v35 = vpop.xlane.xlu1 %77 }
 0x17c   :  { %278 = vrcp.f32 %v78_v35 }
 0x182   :  { %v279_v36 = vpop.eup %278 }
 0x183   :  { %v83_v37 = vmul.f32 %v279_v36, %v78_v35  ;;  %v80_v38 = vpop.xlane.xlu1 %79 }
 0x184   :  { %280 = vrcp.f32 %v80_v38 }
 0x185   :  { %v85_v39 = vsub.f32 2.0, %v83_v37 }
 0x187   :  { %v87_v40 = vmul.f32 %v279_v36, %v85_v39 }
 0x189   :  { %v89_v41 = vmul.f32 %v275_v24, %v87_v40  ;;  %v273_v24 = vld [vmem:[%s505_s6] ss:$0 sm:$0xff]  ;;  %s236_s6 = sshll.u32 %s324_s5, 4  ;;  %s237_s6 = int_to_ptr.vmem [resolvable:$true] %s236_s6 }
 0x18a   :  { %v281_v42 = vpop.eup %280 }
 0x18b   :  { %v84_v43 = vmul.f32 %v281_v42, %v80_v38  ;;  %127 = vmatmul.f32.vlgmr.msra.gmra.mxu1 %v89_v41 }
 0x18d   :  { %v86_v44 = vsub.f32 2.0, %v84_v43 }
 0x18f   :  { %v88_v45 = vmul.f32 %v281_v42, %v86_v44 }
 0x191   :  { %v90_v46 = vmul.f32 %v277_v26, %v88_v45 }
 0x193   :  { %130 = vmatmul.f32.vlgmr.msra.gmra.mxu3 %v90_v46 }
 0x208   :  { %v128_v48 = vpop.f32.mrf.mxu1 }
 0x209   :  { %v129_v49 = vadd.f32 %v272_v47, %v128_v48 }
 0x20b   :  { %134 = vmax.xlane.f32.xlu2 %v129_v49 }
 0x216   :  { %v131_v50 = vpop.f32.mrf.mxu3 }
 0x217   :  { %v132_v51 = vadd.f32 %v272_v47, %v131_v50 }
 0x219   :  { %136 = vmax.xlane.f32.xlu2 %v132_v51 }
 0x27e   :  { %v135_v56 = vpop.xlane.xlu2 %134 }
 0x27f   :  { %v138_v58 = vsub.f32 %v129_v49, %v135_v56 }
 0x281   :  { %v140_v60 = vmul.f32 1.442695, %v138_v58 }
 0x283   :  { %282 = vpow2.f32 %v140_v60 }
 0x289   :  { %v283_v63 = vpop.eup %282 }
 0x28a   :  { %144 = vadd.xlane.f32.xlu0 %v283_v63 }
 0x28c   :  { %v137_v0 = vpop.xlane.xlu2 %136 }
 0x28d   :  { %v139_v1 = vsub.f32 %v132_v51, %v137_v0 }
 0x28f   :  { %v142_v2 = vmul.f32 1.442695, %v139_v1 }
 0x291   :  { %284 = vpow2.f32 %v142_v2 }
 0x297   :  { %v285_v3 = vpop.eup %284 }
 0x298   :  { %146 = vadd.xlane.f32.xlu1 %v285_v3 }
 0x2fd   :  { %v145_v12 = vpop.xlane.xlu0 %144 }
 0x2fe   :  { %286 = vrcp.f32 %v145_v12 }
 0x304   :  { %v287_v13 = vpop.eup %286 }
 0x305   :  { %v150_v14 = vmul.f32 %v287_v13, %v145_v12 }
 0x307   :  { %v152_v15 = vsub.f32 2.0, %v150_v14 }
 0x309   :  { %v154_v16 = vmul.f32 %v287_v13, %v152_v15 }
 0x30b   :  { %v147_v17 = vpop.xlane.xlu1 %146  ;;  %v156_v18 = vmul.f32 %v283_v63, %v154_v16 }
 0x30c   :  { %288 = vrcp.f32 %v147_v17 }
 0x30d   :  { %194 = vmatmul.f32.vlgmr.msra.gmra.mxu2 %v156_v18 }
 0x312   :  { %v289_v19 = vpop.eup %288 }
 0x313   :  { %v151_v20 = vmul.f32 %v289_v19, %v147_v17 }
 0x315   :  { %v153_v21 = vsub.f32 2.0, %v151_v20 }
 0x317   :  { %v155_v22 = vmul.f32 %v289_v19, %v153_v21 }
 0x319   :  { %v157_v23 = vmul.f32 %v285_v3, %v155_v22 }
 0x31b   :  { %197 = vmatmul.f32.gmra.mxu2 %v157_v23 }
 0x390   :  { %v195_v25 = vpop.f32.mrf.mxu2 }
 0x391   :  { %v196_v26 = vadd.f32 %v273_v24, %v195_v25 }
 0x393   :  { %v202_v27 = vsel %vm201_vm1, %v196_v26, -inf }
 0x394   :  { %203 = vmax.xlane.f32.xlu2 %v202_v27 }
 0x39e   :  { %v198_v28 = vpop.f32.mrf.mxu2 }
 0x39f   :  { %v199_v29 = vadd.f32 %v273_v24, %v198_v28 }
 0x3a1   :  { %v205_v30 = vsel %vm201_vm1, %v199_v29, -inf }
 0x3a2   :  { %206 = vmax.xlane.f32.xlu0 %v205_v30 }
 0x407   :  { %v204_v31 = vpop.xlane.xlu2 %203 }
 0x408   :  { %v208_v32 = vsub.f32 %v196_v26, %v204_v31 }
 0x40a   :  { %v210_v33 = vmul.f32 1.442695, %v208_v32 }
 0x40c   :  { %290 = vpow2.f32 %v210_v33 }
 0x412   :  { %v291_v34 = vpop.eup %290 }
 0x413   :  { %v214_v35 = vsel %vm201_vm1, %v291_v34, 0.0 }
 0x414   :  { %215 = vadd.xlane.f32.xlu1 %v214_v35 }
 0x415   :  { %v207_v36 = vpop.xlane.xlu0 %206 }
 0x416   :  { %v209_v37 = vsub.f32 %v199_v29, %v207_v36 }
 0x418   :  { %v212_v38 = vmul.f32 1.442695, %v209_v37 }
 0x41a   :  { %292 = vpow2.f32 %v212_v38 }
 0x420   :  { %v293_v39 = vpop.eup %292 }
 0x421   :  { %v217_v40 = vsel %vm201_vm1, %v293_v39, 0.0 }
 0x422   :  { %218 = vadd.xlane.f32.xlu2 %v217_v40 }
 0x487   :  { %v216_v41 = vpop.xlane.xlu1 %215 }
 0x488   :  { %294 = vrcp.f32 %v216_v41 }
 0x48e   :  { %v295_v42 = vpop.eup %294 }
 0x48f   :  { %v222_v43 = vmul.f32 %v295_v42, %v216_v41 }
 0x491   :  { %v224_v44 = vsub.f32 2.0, %v222_v43 }
 0x493   :  { %v226_v45 = vmul.f32 %v295_v42, %v224_v44 }
 0x495   :  { %v228_v46 = vmul.f32 %v291_v34, %v226_v45  ;;  %v219_v47 = vpop.xlane.xlu2 %218 }
 0x496   :  { %296 = vrcp.f32 %v219_v47 }
 0x497   :  { %230 = vst.msk [vmem:[#allocation2] sm:$0xff] %vm201_vm1, %v228_v46 }
 0x49c   :  { %v297_v48 = vpop.eup %296 }
 0x49d   :  { %v223_v49 = vmul.f32 %v297_v48, %v219_v47 }
 0x49f   :  { %v225_v50 = vsub.f32 2.0, %v223_v49 }
 0x4a1   :  { %v227_v51 = vmul.f32 %v297_v48, %v225_v50 }
 0x4a3   :  { %v229_v52 = vmul.f32 %v293_v39, %v227_v51 }
 0x4a5   :  { %231 = vst.msk [vmem:[#allocation2 + $0x8] sm:$0xff] %vm201_vm1, %v229_v52 }
 0x4a6   :  { %244 = dma.vmem_to_hbm [thread:$0]  %s237_s6, 256, %s239_s26, [#allocation3], %s325_s27, %s325_s27, %s326_s28  }
 0x4a7   :  { %322 = dma.done.wait [#allocation3], 256  }
 0x4a8   :  { %323 = vsyncadd [#allocation3], 4294967040 }
 0x4a9   :  { %249 = vsyncpa [#allocation3], 1 }

</bundles_post_ra>
